<compile_context>
chip_gen: v5e
topology: v5e:2x2
jax: 0.10.0
libtpu: 0.0.40
codegen_flags: <defaults>
</compile_context>

<pallas_src>
import jax
import jax.numpy as jnp
from jax.experimental import pallas as pl
from jax.experimental.pallas import tpu as pltpu

EPS = 1e-12  # F.normalize default eps (clamp_min on the norm)


def _make_kernel(hw, hw_tile, needs_mask):
    """Builds the kernel body, closing over static spatial-tiling parameters."""

    def kernel(x_ref, w_ref, bias_ref, out_ref, acc_ref):
        """Grid = (B, num_hw_tiles); one step = one spatial tile of one batch element.

        x_ref:    (1, C, T)  VMEM tile: channels on sublanes, pixels on lanes (native dtype)
        w_ref:    (4, C)     conv weight, VMEM (MXU LHS)
        bias_ref: (4, 1)     conv bias, VMEM (lane-broadcast add)
        out_ref:  (1, 1, 3)  per-batch output block, written once at the last spatial tile
        acc_ref:  (3, 1)     VMEM scratch: confidence-weighted pooled partial sums
        """
        t = pl.program_id(1)
        nt = pl.num_programs(1)

        @pl.when(t == 0)
        def _init():
            acc_ref[...] = jnp.zeros_like(acc_ref)

        x = x_ref[0]                                            # (C, T), native dtype

        # 1x1 conv == per-pixel channel contraction -> MXU matmul, f32 accumulate.
        y = jnp.dot(w_ref[...], x.astype(w_ref.dtype),
                    preferred_element_type=jnp.float32)         # (4, T) f32
        y = y + bias_ref[...]                                   # (4, 1) lane-broadcast bias

        rgb = y[0:3, :]                                         # (3, T)
        conf = y[3:4, :]                                        # (1, T)

        # Per-pixel L2 normalize over the 3 rgb channels, fused with the confidence
        # weight: rgb_n * conf = rgb * (conf * rsqrt(max(|rgb|^2, eps^2))).
        ss = (y[0:1, :] * y[0:1, :]
              + y[1:2, :] * y[1:2, :]
              + y[2:3, :] * y[2:3, :])                          # (1, T)
        cw = conf * jax.lax.rsqrt(jnp.maximum(ss, EPS * EPS))   # (1, T)

        weighted = rgb * cw                                     # (3, T)
        if needs_mask:
            # Tail tile: lanes past HW hold undefined data; mask the *product*
            # (select, not multiply) so garbage/NaN never reaches the sum.
            lane = jax.lax.broadcasted_iota(jnp.int32, (1, hw_tile), 1)
            valid = (t * hw_tile + lane) < hw
            weighted = jnp.where(valid, weighted, 0.0)

        # Reduce this tile along lanes (XLU) and accumulate into a tiny scratch.
        acc_ref[...] = acc_ref[...] + jnp.sum(weighted, axis=1, keepdims=True)  # (3, 1)

        @pl.when(t == nt - 1)
        def _finalize():
            p = acc_ref[...]                                    # (3, 1)
            ssp = (p[0:1, :] * p[0:1, :]
                   + p[1:2, :] * p[1:2, :]
                   + p[2:3, :] * p[2:3, :])                     # (1, 1)
            inv = jax.lax.rsqrt(jnp.maximum(ssp, EPS * EPS))
            row = jnp.concatenate([p[0:1, :], p[1:2, :], p[2:3, :]], axis=1) * inv  # (1, 3)
            out_ref[0] = row                                    # (1, 3) into (1,1,3) block

    return kernel


def _pick_hw_tile(hw, bytes_per_pixel, target_step_bytes=2 << 20):
    """Spatial tile: full HW if small, otherwise a multiple of 128 sized for ~2 MiB/step."""
    if hw <= 128:
        return hw                                   # single full-extent block
    desired = max(128, (target_step_bytes // max(bytes_per_pixel, 1)) // 128 * 128)
    return int(min(desired, (hw // 128) * 128))     # tail (if any) handled by lane mask


def confidence_pooling_head(x_nchw, weight, bias, hw_tile=None):
    """x_nchw: (B, C_in, H, W); weight: (4, C_in, 1, 1); bias: (4,). Returns (B, 3) f32."""
    B, C, H, W = x_nchw.shape
    HW = H * W
    itemsize = jnp.dtype(x_nchw.dtype).itemsize

    if hw_tile is None:
        hw_tile = _pick_hw_tile(HW, C * itemsize)
    assert hw_tile == HW or hw_tile % 128 == 0, (HW, hw_tile)
    num_tiles = pl.cdiv(HW, hw_tile)
    needs_mask = (HW % hw_tile) != 0

    # Free reshape only (no transpose, no dtype cast): channels stay on the slow axis,
    # pixels on the lane axis; HBM traffic stays in the input's native dtype.
    x_flat = x_nchw.reshape(B, C, HW)

    # bf16 inputs feed the MXU at native width; otherwise keep weights exact f32.
    param_dtype = jnp.bfloat16 if x_nchw.dtype == jnp.bfloat16 else jnp.float32
    w2 = weight.reshape(4, C).astype(param_dtype)       # (4, C)  -> VMEM (MXU LHS)
    b2 = bias.reshape(4, 1).astype(jnp.float32)          # (4, 1)  -> VMEM broadcast add

    out = pl.pallas_call(
        _make_kernel(HW, hw_tile, needs_mask),
        out_shape=jax.ShapeDtypeStruct((B, 1, 3), jnp.float32),
        grid=(B, num_tiles),
        in_specs=[
            pl.BlockSpec((1, C, hw_tile), lambda b, t: (b, 0, t)),
            pl.BlockSpec((4, C), lambda b, t: (0, 0)),     # resident across the grid
            pl.BlockSpec((4, 1), lambda b, t: (0, 0)),     # resident across the grid
        ],
        # Per-batch output block (safe under megacore batch sharding), resident across
        # the spatial (reduction) axis and written once at finalize.
        out_specs=pl.BlockSpec((1, 1, 3), lambda b, t: (b, 0, 0)),
        scratch_shapes=[pltpu.VMEM((3, 1), jnp.float32)],
        compiler_params=pltpu.CompilerParams(
            dimension_semantics=("parallel", "arbitrary"),
            vmem_limit_bytes=32 * 1024 * 1024,
        ),
    )(x_flat, w2, b2)
    return out.reshape(B, 3)


def reference_forward(x_nchw, weight, bias):
    """Pure-JAX reference mirroring the PyTorch module (eval mode)."""
    B, C, H, W = x_nchw.shape
    w = weight.reshape(4, C).astype(jnp.float32)
    y = jnp.einsum("oc,bchw->bohw", w, x_nchw.astype(jnp.float32))
    y = y + bias.astype(jnp.float32)[None, :, None, None]
    rgb = y[:, :3]
    nrm = jnp.sqrt(jnp.sum(rgb * rgb, axis=1, keepdims=True))
    rgb_n = rgb / jnp.maximum(nrm, EPS)
    conf = y[:, 3:4]
    pooled = jnp.sum(rgb_n * conf, axis=(2, 3))                   # (B, 3)
    pnrm = jnp.sqrt(jnp.sum(pooled * pooled, axis=1, keepdims=True))
    return pooled / jnp.maximum(pnrm, EPS)


if __name__ == "__main__":
    B, C_IN, H, W = 2, 8, 16, 16
    C_OUT = 4

    key = jax.random.PRNGKey(0)
    kx, kw, kb = jax.random.split(key, 3)

    # Deterministic synthetic inputs / parameters (no checkpoint loading).
    x = jax.random.normal(kx, (B, C_IN, H, W), dtype=jnp.float32)
    weight = jax.random.normal(kw, (C_OUT, C_IN, 1, 1), dtype=jnp.float32) * 0.1
    bias = jax.random.normal(kb, (C_OUT,), dtype=jnp.float32) * 0.1

    # Tolerance: MXU f32 matmul may use multi-pass bf16; outputs are unit vectors in R^3,
    # so 2e-3 is still a tight (~0.1 degree) check that catches any semantic bug.
    ATOL = RTOL = 2e-3

    # 1) Multi-tile accumulate/finalize path: HW = 256, explicit hw_tile = 128.
    out = jax.block_until_ready(confidence_pooling_head(x, weight, bias, hw_tile=128))
    ref = reference_forward(x, weight, bias)
    assert out.shape == (B, 3), out.shape
    assert jnp.allclose(out, ref, atol=ATOL, rtol=RTOL), (out, ref)

    # 2) Masked tail path: HW = 144 is not a multiple of the 128-lane tile.
    x2 = jax.random.normal(kx, (B, C_IN, 12, 12), dtype=jnp.float32)
    out2 = jax.block_until_ready(confidence_pooling_head(x2, weight, bias))
    ref2 = reference_forward(x2, weight, bias)
    assert jnp.allclose(out2, ref2, atol=ATOL, rtol=RTOL), (out2, ref2)

    print("KERNEL_OK")
</pallas_src>

<mosaic_0001>
module attributes {stable_mosaic.version = 11 : i64} {
  func.func @kernel(%arg0: i32, %arg1: i32, %arg2: memref<1x8x128xf32, #tpu.memory_space<vmem>>, %arg3: memref<4x8xf32, #tpu.memory_space<vmem>>, %arg4: memref<4x1xf32, #tpu.memory_space<vmem>>, %arg5: memref<1x1x3xf32, #tpu.memory_space<vmem>>, %arg6: memref<3x1xf32, #tpu.memory_space<vmem>>) attributes {dimension_semantics = [#tpu.dimension_semantics<parallel>, #tpu.dimension_semantics<arbitrary>], iteration_bounds = array<i64: 2, 2>, scalar_prefetch = 0 : i64, scratch_operands = 1 : i64, tpu.core_type = #tpu.core_type<tc>, window_params = [{transform_indices = @transform_0, window_bounds = array<i64: 1, 8, 128>}, {pipeline_mode = #tpu.pipeline_mode<synchronous>, transform_indices = @transform_1, window_bounds = array<i64: 4, 8>}, {pipeline_mode = #tpu.pipeline_mode<synchronous>, transform_indices = @transform_2, window_bounds = array<i64: 4, 1>}, {transform_indices = @transform_3, window_bounds = array<i64: 1, 1, 3>}]} {
    %c0_i32 = arith.constant 0 : i32
    %0 = arith.cmpi eq, %arg1, %c0_i32 : i32
    %1 = arith.extui %0 : i1 to i32
    %c0_i32_0 = arith.constant 0 : i32
    %2 = arith.cmpi ne, %1, %c0_i32_0 : i32
    scf.if %2 {
      %cst_14 = arith.constant 0.000000e+00 : f32
      %37 = vector.broadcast %cst_14 : f32 to vector<3x1xf32>
      %c0_15 = arith.constant 0 : index
      %c0_16 = arith.constant 0 : index
      %38 = vector.load %arg6[%c0_15, %c0_16] : memref<3x1xf32, #tpu.memory_space<vmem>>, vector<3x1xf32>
      tpu.vector_store %arg6[%c0_15, %c0_16], %37 {strides = array<i32>} : memref<3x1xf32, #tpu.memory_space<vmem>>, vector<3x1xf32>,
    } else {
    }
    %c0 = arith.constant 0 : index
    %c0_1 = arith.constant 0 : index
    %c0_2 = arith.constant 0 : index
    %3 = vector.load %arg2[%c0, %c0_1, %c0_2] : memref<1x8x128xf32, #tpu.memory_space<vmem>>, vector<1x8x128xf32>
    %4 = vector.shape_cast %3 : vector<1x8x128xf32> to vector<8x128xf32>
    %c0_3 = arith.constant 0 : index
    %c0_4 = arith.constant 0 : index
    %5 = vector.load %arg3[%c0_3, %c0_4] : memref<4x8xf32, #tpu.memory_space<vmem>>, vector<4x8xf32>
    %cst = arith.constant dense<0.000000e+00> : vector<4x128xf32>
    %6 = tpu.matmul %5, %4, %cst {dimension_numbers = #tpu.dot_dimension_numbers<[1], [0], [0], [1], [0, 0, 1, 1], [], []>} : vector<4x8xf32>, vector<8x128xf32>, vector<4x128xf32> -> vector<4x128xf32>
    %c0_5 = arith.constant 0 : index
    %c0_6 = arith.constant 0 : index
    %7 = vector.load %arg4[%c0_5, %c0_6] : memref<4x1xf32, #tpu.memory_space<vmem>>, vector<4x1xf32>
    %8 = vector.broadcast %7 : vector<4x1xf32> to vector<4x128xf32>
    %9 = arith.addf %6, %8 : vector<4x128xf32>
    %10 = vector.extract_strided_slice %9 {offsets = [0, 0], sizes = [3, 128], strides = [1, 1]} : vector<4x128xf32> to vector<3x128xf32>
    %11 = vector.extract_strided_slice %9 {offsets = [3, 0], sizes = [1, 128], strides = [1, 1]} : vector<4x128xf32> to vector<1x128xf32>
    %12 = vector.extract_strided_slice %9 {offsets = [0, 0], sizes = [1, 128], strides = [1, 1]} : vector<4x128xf32> to vector<1x128xf32>
    %13 = vector.extract_strided_slice %9 {offsets = [0, 0], sizes = [1, 128], strides = [1, 1]} : vector<4x128xf32> to vector<1x128xf32>
    %14 = arith.mulf %12, %13 : vector<1x128xf32>
    %15 = vector.extract_strided_slice %9 {offsets = [1, 0], sizes = [1, 128], strides = [1, 1]} : vector<4x128xf32> to vector<1x128xf32>
    %16 = vector.extract_strided_slice %9 {offsets = [1, 0], sizes = [1, 128], strides = [1, 1]} : vector<4x128xf32> to vector<1x128xf32>
    %17 = arith.mulf %15, %16 : vector<1x128xf32>
    %18 = arith.addf %14, %17 : vector<1x128xf32>
    %19 = vector.extract_strided_slice %9 {offsets = [2, 0], sizes = [1, 128], strides = [1, 1]} : vector<4x128xf32> to vector<1x128xf32>
    %20 = vector.extract_strided_slice %9 {offsets = [2, 0], sizes = [1, 128], strides = [1, 1]} : vector<4x128xf32> to vector<1x128xf32>
    %21 = arith.mulf %19, %20 : vector<1x128xf32>
    %22 = arith.addf %18, %21 : vector<1x128xf32>
    %cst_7 = arith.constant 1.000000e-24 : f32
    %23 = vector.broadcast %cst_7 : f32 to vector<1x128xf32>
    %24 = arith.maximumf %22, %23 : vector<1x128xf32>
    %25 = math.rsqrt %24 : vector<1x128xf32>
    %26 = arith.mulf %11, %25 : vector<1x128xf32>
    %27 = vector.broadcast %26 : vector<1x128xf32> to vector<3x128xf32>
    %28 = arith.mulf %10, %27 : vector<3x128xf32>
    %c0_8 = arith.constant 0 : index
    %c0_9 = arith.constant 0 : index
    %29 = vector.load %arg6[%c0_8, %c0_9] : memref<3x1xf32, #tpu.memory_space<vmem>>, vector<3x1xf32>
    %cst_10 = arith.constant dense<0.000000e+00> : vector<3xf32>
    %30 = vector.multi_reduction <add>, %28, %cst_10 [1] : vector<3x128xf32> to vector<3xf32>
    %31 = vector.shape_cast %30 : vector<3xf32> to vector<3x1xf32>
    %32 = arith.addf %29, %31 : vector<3x1xf32>
    %c0_11 = arith.constant 0 : index
    %c0_12 = arith.constant 0 : index
    %33 = vector.load %arg6[%c0_11, %c0_12] : memref<3x1xf32, #tpu.memory_space<vmem>>, vector<3x1xf32>
    tpu.vector_store %arg6[%c0_11, %c0_12], %32 {strides = array<i32>} : memref<3x1xf32, #tpu.memory_space<vmem>>, vector<3x1xf32>,
    %c1_i32 = arith.constant 1 : i32
    %34 = arith.cmpi eq, %arg1, %c1_i32 : i32
    %35 = arith.extui %34 : i1 to i32
    %c0_i32_13 = arith.constant 0 : i32
    %36 = arith.cmpi ne, %35, %c0_i32_13 : i32
    scf.if %36 {
      %c0_14 = arith.constant 0 : index
      %c0_15 = arith.constant 0 : index
      %37 = vector.load %arg6[%c0_14, %c0_15] : memref<3x1xf32, #tpu.memory_space<vmem>>, vector<3x1xf32>
      %38 = vector.extract_strided_slice %37 {offsets = [0, 0], sizes = [1, 1], strides = [1, 1]} : vector<3x1xf32> to vector<1x1xf32>
      %39 = vector.extract_strided_slice %37 {offsets = [0, 0], sizes = [1, 1], strides = [1, 1]} : vector<3x1xf32> to vector<1x1xf32>
      %40 = arith.mulf %38, %39 : vector<1x1xf32>
      %41 = vector.extract_strided_slice %37 {offsets = [1, 0], sizes = [1, 1], strides = [1, 1]} : vector<3x1xf32> to vector<1x1xf32>
      %42 = vector.extract_strided_slice %37 {offsets = [1, 0], sizes = [1, 1], strides = [1, 1]} : vector<3x1xf32> to vector<1x1xf32>
      %43 = arith.mulf %41, %42 : vector<1x1xf32>
      %44 = arith.addf %40, %43 : vector<1x1xf32>
      %45 = vector.extract_strided_slice %37 {offsets = [2, 0], sizes = [1, 1], strides = [1, 1]} : vector<3x1xf32> to vector<1x1xf32>
      %46 = vector.extract_strided_slice %37 {offsets = [2, 0], sizes = [1, 1], strides = [1, 1]} : vector<3x1xf32> to vector<1x1xf32>
      %47 = arith.mulf %45, %46 : vector<1x1xf32>
      %48 = arith.addf %44, %47 : vector<1x1xf32>
      %cst_16 = arith.constant 1.000000e-24 : f32
      %49 = vector.broadcast %cst_16 : f32 to vector<1x1xf32>
      %50 = arith.maximumf %48, %49 : vector<1x1xf32>
      %51 = math.rsqrt %50 : vector<1x1xf32>
      %52 = vector.extract_strided_slice %37 {offsets = [0, 0], sizes = [1, 1], strides = [1, 1]} : vector<3x1xf32> to vector<1x1xf32>
      %53 = vector.extract_strided_slice %37 {offsets = [1, 0], sizes = [1, 1], strides = [1, 1]} : vector<3x1xf32> to vector<1x1xf32>
      %54 = vector.extract_strided_slice %37 {offsets = [2, 0], sizes = [1, 1], strides = [1, 1]} : vector<3x1xf32> to vector<1x1xf32>
      %55 = tpu.concatenate %52, %53, %54 in 1 : vector<1x1xf32>, vector<1x1xf32>, vector<1x1xf32> -> vector<1x3xf32>
      %56 = vector.broadcast %51 : vector<1x1xf32> to vector<1x3xf32>
      %57 = arith.mulf %55, %56 : vector<1x3xf32>
      %c0_17 = arith.constant 0 : index
      %c0_18 = arith.constant 0 : index
      %c0_19 = arith.constant 0 : index
      %58 = vector.load %arg5[%c0_17, %c0_18, %c0_19] : memref<1x1x3xf32, #tpu.memory_space<vmem>>, vector<1x1x3xf32>
      %59 = vector.shape_cast %58 : vector<1x1x3xf32> to vector<1x3xf32>
      %60 = vector.shape_cast %57 : vector<1x3xf32> to vector<1x1x3xf32>
      tpu.vector_store %arg5[%c0_17, %c0_18, %c0_19], %60 {strides = array<i32>} : memref<1x1x3xf32, #tpu.memory_space<vmem>>, vector<1x1x3xf32>,
    } else {
    }
    return
  }
  func.func @transform_0(%arg0: i32, %arg1: i32) -> (i32, i32, i32) {
    %c0_i32 = arith.constant 0 : i32
    %c0_i32_0 = arith.constant 0 : i32
    return %arg0, %c0_i32, %arg1 : i32, i32, i32
  }
  func.func @transform_1(%arg0: i32, %arg1: i32) -> (i32, i32) {
    %c0_i32 = arith.constant 0 : i32
    %c0_i32_0 = arith.constant 0 : i32
    %c0_i32_1 = arith.constant 0 : i32
    return %c0_i32, %c0_i32_0 : i32, i32
  }
  func.func @transform_2(%arg0: i32, %arg1: i32) -> (i32, i32) {
    %c0_i32 = arith.constant 0 : i32
    %c0_i32_0 = arith.constant 0 : i32
    %c0_i32_1 = arith.constant 0 : i32
    return %c0_i32, %c0_i32_0 : i32, i32
  }
  func.func @transform_3(%arg0: i32, %arg1: i32) -> (i32, i32, i32) {
    %c0_i32 = arith.constant 0 : i32
    %c0_i32_0 = arith.constant 0 : i32
    %c0_i32_1 = arith.constant 0 : i32
    return %arg0, %c0_i32, %c0_i32_0 : i32, i32, i32
  }
}

</mosaic_0001>

<bundles_post_ra>
// kernel: tpu_custom_call.1
= control target key start
LH: loop header
LB: loop body
LE: loop exit
PB: predicated region body
PF: predicated region fallthrough
CT: control target
= control target key end

     0   :  { %8 = vsyncpa [#allocation4], 0  ;;  %s900_s0 = inlined_call_operand.hbm [shape: f32[2,8,256], index: 0, kind: input, shape index: {}]   ;;  %s901_s1 = inlined_call_operand.vmem [shape: f32[4,8], index: 1, kind: input, shape index: {}]   ;;  %s902_s2 = inlined_call_operand.vmem [shape: f32[4,1], index: 2, kind: input, shape index: {}]   ;;  %s903_s3 = inlined_call_operand.hbm [shape: f32[2,1,3], index: 3, kind: output, shape index: {}]  }
   0x1   :  { %10 = vsyncpa [#allocation4 + $0x1], 0 }
   0x2   :  { %11 = vsyncpa [#allocation5], 0 }
   0x3   :  { %13 = vsyncpa [#allocation5 + $0x1], 0  ;;  %s718_s12 = smov 0   ;;  %s720_s13 = smov 0  }
   0x4   :  { %s722_s14 = smov 0   ;;  %s724_s15 = smov 0  }
   0x5   :  { %s726_s16 = smov 0   ;;  %s728_s17 = smov 0  }
   0x6   :  { %s730_s18 = smov 0   ;;  %s732_s19 = smov 0  }
   0x7   :  { %s734_s20 = smov 0   ;;  %s736_s21 = smov 0  }
   0x8   :  { %s738_s22 = smov 0  }
   0x9 LB: > { %s411_s23 = sadd.s32 4294967295, %s691_s22   ;;  %s412_s24 = sadd.s32 4294967294, %s691_s22   ;;  %s691_s22 = sphi %s738_s22, %s19_s22   ;;  %s687_s21 = sphi %s736_s21, %s925_s21   ;;  %s683_s20 = sphi %s734_s20, %s924_s20   ;;  %s679_s19 = sphi %s732_s19, %s923_s19   ;;  %s675_s18 = sphi %s730_s18, %s922_s18   ;;  %s671_s17 = sphi %s728_s17, %s921_s17   ;;  %s667_s16 = sphi %s726_s16, %s920_s16   ;;  %s663_s15 = sphi %s724_s15, %s919_s15   ;;  %s659_s14 = sphi %s722_s14, %s918_s14   ;;  %s655_s13 = sphi %s720_s13, %s917_s13   ;;  %s651_s12 = sphi %s718_s12, %s916_s12  }
   0xa   : > { %s28_s25 = sadd.s32 1, %s683_s20  ;;  %s31_s26 = sadd.s32 1, %s687_s21 }
   0xb   : > { %p29_p0 = scmp.ge.s32.totalorder %s28_s25, 2  ;;  %s40_s27 = sadd.s32 1, %s671_s17 }
   0xc   : > { %p47_p1 = scmp.ne.s32.totalorder %s671_s17, %s667_s16  ;;  %p48_p2 = scmp.eq.s32.totalorder %s691_s22, 0 }
   0xd   : > { %s927_s25 = smov (%p29_p0, %s28_s25), 0  ;;  %s929_s26 = smov (!%p29_p0, %s31_s26), %s687_s21 }
   0xe   : > { %906 = sst [smem:[#allocation9_spill]] %s927_s25  ;;  %s36_s28 = ssub.s32 %s683_s20, %s927_s25 }
   0xf   : > { %p784_p3 = por %p48_p2, %p47_p1  ;;  %p33_p4 = scmp.ge.s32.totalorder %s929_s26, 2 }
  0x10   : > { %p53_p5 = scmp.ne.s32.totalorder %s667_s16, %s663_s15  ;;  %p54_p6 = scmp.eq.s32.totalorder %s411_s23, 0 }
  0x11   : > { %s108_s30 = sadd.s32 1, %s659_s14  ;;  %s931_s26 = smov (%p33_p4, %s929_s26), 0 }
  0x12   : > { %908 = sst [smem:[#allocation10_spill]] %s931_s26  ;;  %p792_p7 = por %p54_p6, %p53_p5 }
  0x13   : > { %p118_p8 = scmp.ne.s32.totalorder %s659_s14, %s655_s13  ;;  %s35_s5 = ssub.s32 %s687_s21, %s931_s26 }
  0x14   : > { %p119_p9 = scmp.eq.s32.totalorder %s411_s23, 3  ;;  %s37_s6 = sor.u32 %s36_s28, %s35_s5 }
  0x15   : > { %p106_p10 = scmp.eq.s32.totalorder %s35_s5, 0  ;;  %p38_p11 = scmp.eq.s32.totalorder %s37_s6, 0 }
  0x16   : > { %p800_p12 = por %p119_p9, %p118_p8  ;;  %p124_p13 = scmp.ne.s32.totalorder %s655_s13, %s651_s12 }
  0x17   : > { %s805_s8 = scalar_select %p106_p10, %s659_s14, %s108_s30  }
  0x18   : > { %s808_s9 = scalar_select %p38_p11, %s671_s17, %s40_s27  }
  0x19   : > { %p125_p0 = scmp.eq.s32.totalorder %s412_s24, 3  ;;  %p437_p1 = scmp.lt.s32.totalorder %s691_s22, 4 }
  0x1a   : > { %911 = sst [smem:[#allocation11_spill]] %s808_s9  ;;  %s151_s11 = sand.u32 1, %s671_s17  }
  0x1b   : > { %p813_p2 = por %p125_p0, %p124_p13  ;;  %s415_s15 = sshll.u32 %s151_s11, 3 }
  0x1c   : > { %s416_s23 = sshll.u32 %s687_s21, 1  ;;  %s155_s5 = scalar_lea.vmem [#allocation3], %s415_s15 }
  0x1d   : > { %s159_s28 = sadd.s32 %s683_s20, %s416_s23  ;;  %s165_s6 = sshll.u32 %s155_s5, 4  ;;  %s166_s6 = int_to_ptr.vmem [resolvable:$true] %s165_s6 }
  0x1e   : > { %s417_s26 = sshll.u32 %s159_s28, 3  ;;  %p430_p4 = pnand %p437_p1, %p784_p3 }
  0x1f   : > { %s161_s25 = scalar_lea.hbm %s900_s0, %s417_s26  ;;  %p418_p5 = scmp.ge.s32.totalorder %s691_s22, 1 }
  0x20   : > { %s163_s24 = sshll.u32 %s161_s25, 4  ;;  %s152_s9 = scalar_lea.sflag [#allocation4], %s151_s11  ;;  %s164_s24 = int_to_ptr.hbm [resolvable:$true] %s163_s24 }
  0x21   : > { %432 = dma.hbm_to_vmem [thread:$0]  (!%p430_p4), %s164_s24, 128, %s166_s6, %s152_s9  }
  0x22   : > { %p170_p6 = scmp.lt.s32.totalorder %s691_s22, 5 }
  0x24   : > { %p171_p8 = pnand %p418_p5, %p170_p6 }
  0x25   : > { %s176_s15 = sand.u32 (!%p171_p8), 1, %s667_s16  }
  0x26   : > { %174 = sbr.rel (%p171_p8) target bundleno = 506 (0x1fa), region = 32  ;;  %s419_s23 = sshll.u32 (!%p171_p8), %s176_s15, 3 }
  0x27   : > { %s177_s28 = scalar_lea.sflag (!%p171_p8), [#allocation4], %s176_s15  ;;  %s180_s5 = scalar_lea.vmem (!%p171_p8), [#allocation3], %s419_s23 }
  0x2b   : > { %642 = dma.done.wait (%p792_p7), %s177_s28, 128  }
  0x2c   : > { %644 = vsyncadd (%p792_p7), %s177_s28, 4294967168  ;;  %s201_s25 = sand.u32 1, %s655_s13   ;;  %p420_p3 = scmp.ne.s32.totalorder %s675_s18, 0 }
  0x2d   : > { %s835_s26 = scalar_lea.vmem [#allocation6], %s201_s25 }
  0x2e   : > { %206 = sbr.rel (%p420_p3) target bundleno = 53 (0x35), region = 40 }
  0x33   : > { %vm207_vm0 = vcmask 2048   ;;  %v693_v0 = vmov 0.0  }
  0x34   : > { %208 = vst.msk [vmem:[#allocation2] sm:$0x7] %vm207_vm0, %v693_v0 }
  0x35 PF: > { %v209_v1 = vld [vmem:[%s180_s5] sm:$0xff]  ;;  %v210_v2 = vld [vmem:[%s901_s1] sm:$0xf]  ;;  %vm217_vm1 = vcmask 64512   ;;  %v694_v3 = vmov 0   ;;  %vm267_vm5 = vcmask 1042432  }
  0x36   : > { %236 = vmatpush.msra.mxu0 %v209_v1  ;;  %532 = vset.pattern.permute.xlu0 %v694_v3  ;;  %v211_v4 = vld [vmem:[%s902_s2] sm:$0xf]  ;;  %vm272_vm6 = vcmask 2048   ;;  %p422_p7 = scmp.ne.s32.totalorder %s675_s18, 1 }
  0x37   : > { %421 = vmatmul.msk.f32.vlgmr.msra.gmra.mxu0 %vm217_vm1, %v210_v2  ;;  %214 = vperm.xlu0 %532, %v211_v4   ;;  %s696_s6 = smov (!%p422_p7), 1   ;;  %s697_s30 = smov (!%p422_p7), 2  }
  0x3b   : > { %v266_v26 = vld [vmem:[#allocation2] sm:$0x7] }
  0xa9   : > { %v215_v5 = vpop.permute.xlu0 %214 }
  0xb4   : > { %v238_v6 = vpop.f32.mrf.mxu0 }
  0xb5   : > { %v239_v7 = vadd.f32 %v238_v6, %v215_v5 }
  0xb7   : > { %v241_v8 = vmul.f32 %v239_v7, %v239_v7 }
  0xb9   : > { %v243_v9 = vrot.slane %v241_v8, 1  ;;  %v246_v11 = vrot.slane %v241_v8, 2 }
  0xbb   : > { %v245_v10 = vadd.f32 %v243_v9, %v241_v8 }
  0xbd   : > { %v248_v12 = vadd.f32 %v246_v11, %v245_v10 }
  0xbf   : > { %v249_v13 = vmax.f32 %v248_v12, 1e-24 }
  0xc1   : > { %533 = vrsqrt.f32 %v249_v13  ;;  %vm256_vm3 = vweird.f32 %v249_v13 }
  0xc7   : > { %v534_v14 = vpop.eup %533 }
  0xc8   : > { %v251_v15 = vmul.f32 %v534_v14, %v249_v13  ;;  %vm257_vm2 = vweird.f32 %v534_v14 }
  0xc9   : > { %vm258_vm4 = vmor %vm256_vm3, %vm257_vm2 }
  0xca   : > { %v252_v16 = vmul.f32 %v534_v14, %v251_v15 }
  0xcc   : > { %v253_v17 = vmul.f32 0.5, %v252_v16 }
  0xce   : > { %v254_v18 = vsub.f32 1.5, %v253_v17 }
  0xd0   : > { %v255_v19 = vmul.f32 %v534_v14, %v254_v18 }
  0xd2   : > { %v259_v20 = vsel %vm258_vm4, %v534_v14, %v255_v19 }
  0xd3   : > { %v261_v21 = vrot.slane %v259_v20, 5 }
  0xd5   : > { %v263_v22 = vmul.f32 %v261_v21, %v239_v7 }
  0xd7   : > { %v264_v23 = vperm.slane %v263_v22, 3 }
  0xd9   : > { %v265_v24 = vmul.f32 %v264_v23, %v239_v7 }
  0xdb   : > { %v268_v25 = vsel %vm267_vm5, %v265_v24, 0.0 }
  0xdc   : > { %269 = vadd.xlane.f32.xlu0 %v268_v25 }
 0x14e   : > { %277 = sbr.rel (%p422_p7) target bundleno = 492 (0x1ec), region = 44 }
 0x14f   : > { %v270_v27 = vpop.xlane.xlu0 %269 }
 0x150   : > { %v271_v28 = vadd.f32 %v270_v27, %v266_v26 }
 0x152   : > { %273 = vst.msk [vmem:[#allocation2] sm:$0x7] %vm272_vm6, %v271_v28 }
 0x153   : > { %v695_v32 = vmov 0   ;;  %vm307_vm10 = vcmask 7168   ;;  %vm309_vm11 = vcmask 15360   ;;  %vm317_vm12 = vcmask 16384  }
 0x154   : > { %535 = vset.pattern.permute.xlu1 %v695_v32  ;;  %536 = vset.pattern.permute.xlu0 %v695_v32 }
 0x159   : > { %v278_v29 = vld [vmem:[#allocation2] sm:$0x7] }
 0x15a   : > { %v299_v30 = vrot.slane %v278_v29, 1  ;;  %v279_v31 = vmul.f32 %v278_v29, %v278_v29  ;;  %v303_v36 = vrot.slane %v278_v29, 2 }
 0x15c   : > { %300 = vrot.lane.b32.xlu0 %v299_v30, %s696_s6  ;;  %v281_v33 = vrot.slane %v279_v31, 1  ;;  %v284_v34 = vrot.slane %v279_v31, 2 }
 0x15e   : > { %v283_v35 = vadd.f32 %v281_v33, %v279_v31 }
 0x160   : > { %v286_v37 = vadd.f32 %v284_v34, %v283_v35 }
 0x162   : > { %v287_v38 = vmax.f32 %v286_v37, 1e-24 }
 0x164   : > { %304 = vrot.lane.b32.xlu0 %v303_v36, %s697_s30  ;;  %537 = vrsqrt.f32 %v287_v38  ;;  %vm294_vm7 = vweird.f32 %v287_v38 }
 0x16a   : > { %v538_v39 = vpop.eup %537 }
 0x16b   : > { %v289_v40 = vmul.f32 %v538_v39, %v287_v38  ;;  %vm295_vm8 = vweird.f32 %v538_v39 }
 0x16c   : > { %vm296_vm9 = vmor %vm294_vm7, %vm295_vm8 }
 0x16d   : > { %v290_v41 = vmul.f32 %v538_v39, %v289_v40 }
 0x16f   : > { %v291_v42 = vmul.f32 0.5, %v290_v41 }
 0x171   : > { %v292_v43 = vsub.f32 1.5, %v291_v42 }
 0x173   : > { %v293_v44 = vmul.f32 %v538_v39, %v292_v43 }
 0x175   : > { %v297_v45 = vsel %vm296_vm9, %v538_v39, %v293_v44 }
 0x176   : > { %313 = vperm.xlu1 %535, %v297_v45  }
 0x1ce   : > { %v301_v46 = vpop.permute.xlu0 %300 }
 0x1cf   : > { %v308_v47 = vsel %vm307_vm10, %v278_v29, %v301_v46 }
 0x1d6   : > { %v305_v48 = vpop.permute.xlu0 %304 }
 0x1d7   : > { %v310_v49 = vsel %vm309_vm11, %v308_v47, %v305_v48 }
 0x1e8   : > { %v314_v50 = vpop.permute.xlu1 %313 }
 0x1e9   : > { %v316_v51 = vmul.f32 %v314_v50, %v310_v49 }
 0x1eb   : > { %318 = vst.msk [vmem:[%s835_s26] sm:$0x1] %vm317_vm12, %v316_v51 }
 0x1ec PF: > { %s328_s24 = scalar_lea.hbm %s903_s3, %s679_s19  ;;  %s330_s15 = sshll.u32 %s835_s26, 4  ;;  %s331_s15 = int_to_ptr.vmem [resolvable:$true] %s330_s15 }
 0x1ed   : > { %s332_s23 = sshll.u32 %s328_s24, 4  ;;  %s320_s28 = scalar_lea.sflag [#allocation5], %s201_s25  ;;  %s333_s23 = int_to_ptr.hbm [resolvable:$true] %s332_s23 }
 0x1ee   : > { %s583_s5 = sshra.s32 %s333_s23, 4  ;;  %s589_s11 = scalar_lea.hbm %s903_s3, 2  ;;  %s584_s5 = int_to_ptr.hbm [resolvable:$true] %s583_s5 }
 0x1ef   : > { %s585_s29 = scalar_lea.hbm %s584_s5, 1  ;;  %p590_p13 = scmp.lt.s32.totalorder %s584_s5, %s903_s3 }
 0x1f0   : > { %p586_p9 = scmp.ne.s32.totalorder %s584_s5, %s585_s29  ;;  %p591_p0 = scmp.lt.s32.totalorder %s589_s11, %s585_s29 }
 0x1f2   : > { %p587_p10 = pnand %p586_p9, %p800_p12  ;;  %p592_p1 = por %p591_p0, %p590_p13 }
 0x1f4   : > { %p588_p11 = pneg %p587_p10 }
 0x1f6   : > { %p593_p4 = pnand %p592_p1, %p588_p11 }
 0x1f8   : > { %596 = shalt.err (!%p593_p4)
}
 0x1f9   : > { %427 = dma.vmem_to_hbm [thread:$0]  (%p800_p12), %s331_s15, 16, %s333_s23, %s320_s28  }
 0x1fa PF: > { %p438_p5 = scmp.ge.s32.totalorder %s691_s22, 2  ;;  %s344_s19 = sand.u32 1, %s651_s12  }
 0x1fb   : > { %s345_s25 = scalar_lea.sflag [#allocation5], %s344_s19 }
 0x1fc   : > { %p434_p6 = pnand %p438_p5, %p813_p2 }
 0x1fe   : > { %p435_p8 = pneg %p434_p6 }
 0x200   : > { %646 = dma.done.wait (%p435_p8), %s345_s25, 16  }
 0x201   : > { %648 = vsyncadd (%p435_p8), %s345_s25, 4294967280  ;;  %s19_s22 = sadd.s32 1, %s691_s22   ;;  %s913_s7 = sld [smem:[#allocation11_spill]] }
 0x202   : > { %p16_p3 = scmp.ge.s32.totalorder %s19_s22, 6   ;;  %s914_s26 = sld [smem:[#allocation9_spill]] }
 0x203   : > { %s915_s27 = sld [smem:[#allocation10_spill]]  ;;  %s916_s12 = smov %s655_s13 }
 0x204   : > { %s917_s13 = smov %s659_s14  ;;  %s918_s14 = smov %s805_s8 }
 0x205   : > { %s919_s15 = smov %s667_s16  ;;  %s920_s16 = smov %s671_s17 }
 0x206   : > { %s922_s18 = smov %s683_s20  ;;  %s923_s19 = smov %s687_s21 }
 0x207   : > { %s921_s17 = smov %s913_s7  ;;  %18 = sbr.rel (!%p16_p3) target bundleno = 9 (0x9), region = 85 }
 0x208   : > { %s924_s20 = smov %s914_s26 }
 0x209   : > { %s925_s21 = smov %s915_s27 }
 0x20c   :  { %350 = vsyncpa [#allocation4], 1 }
 0x20d   :  { %352 = vsyncpa [#allocation4 + $0x1], 1 }
 0x20e   :  { %353 = vsyncpa [#allocation5], 1 }
 0x20f   :  { %355 = vsyncpa [#allocation5 + $0x1], 1 }

</bundles_post_ra>
